<compile_context>
chip_gen: v7x
topology: tpu7x:2x2x1
jax: 0.10.0
libtpu: 0.0.40
codegen_flags: <defaults>
</compile_context>

<pallas_src>
import jax
import jax.numpy as jnp
from jax.experimental import pallas as pl
from jax.experimental.pallas import tpu as pltpu

_LANES = 128
_TARGET_BLOCK_BYTES = 2 * 1024 * 1024   # ~2 MiB per pipelined buffer
_MIN_GRID_BLOCKS = 4                    # give v7x's 2 TensorCores work to split
_VMEM_LIMIT_BYTES = 32 * 1024 * 1024    # explicit scoped-VMEM cap (safe v5e..v7x)


def _sublane_multiple(dtype) -> int:
    itemsize = jnp.dtype(dtype).itemsize
    return {4: 8, 2: 16, 1: 32}.get(itemsize, 8)


def _display_if_exist_kernel(flag_ref, loss_ref, out_ref):
    """out = loss if flag else NaN, branched once per block (no vselect)."""
    found = flag_ref[0] != 0

    @pl.when(found)
    def _():
        out_ref[...] = loss_ref[...]

    @pl.when(jnp.logical_not(found))
    def _():
        out_ref[...] = jnp.full(out_ref.shape, jnp.nan, out_ref.dtype)


def _choose_block_rows(rows: int, sub: int, itemsize: int) -> int:
    """Largest sublane-aligned row tile <= ~2 MiB, aiming for >= 4 grid blocks."""
    max_rows = max(sub, _TARGET_BLOCK_BYTES // (_LANES * itemsize))
    if rows <= sub:
        return rows                              # single full-extent block
    want = -(-rows // _MIN_GRID_BLOCKS)          # ceil(rows / 4)
    block = -(-want // sub) * sub                # round up to sublane tile
    return max(sub, min(block, max_rows))


def _display_if_exist_pallas(loss: jax.Array, find_flag) -> jax.Array:
    """Kernel path: loss tensor + traced find flag."""
    orig_shape = loss.shape
    dtype = loss.dtype
    if not jnp.issubdtype(dtype, jnp.floating):
        # NaN requires a float dtype; integer losses are promoted to float32.
        dtype = jnp.float32
        loss = loss.astype(dtype)

    itemsize = jnp.dtype(dtype).itemsize
    sub = _sublane_multiple(dtype)

    flat = loss.reshape(-1)
    n = flat.shape[0]
    rows = -(-n // _LANES)                       # ceil(n / 128)
    padded = rows * _LANES != n
    if padded:
        # Only the ragged case (n % 128 != 0) pays a pad + trailing slice.
        flat = jnp.pad(flat, (0, rows * _LANES - n))
    slab = flat.reshape(rows, _LANES)

    block_rows = _choose_block_rows(rows, sub, itemsize)
    grid = pl.cdiv(rows, block_rows)             # Pallas masks the partial last block

    # int32 flag, scalar-prefetched into SMEM so index_maps can read it.
    flag = jnp.asarray(find_flag)
    if flag.dtype != jnp.int32:
        flag = (flag != 0).astype(jnp.int32)
    flag = flag.reshape(1)

    # Missing-property path never reads `loss`: pin every input block index to
    # 0 so only one block is ever DMA'd (Pallas skips repeated block indices).
    def loss_index_map(i, flag_ref):
        return jnp.where(flag_ref[0] != 0, i, 0), 0

    out = pl.pallas_call(
        _display_if_exist_kernel,
        out_shape=jax.ShapeDtypeStruct((rows, _LANES), dtype),
        grid_spec=pltpu.PrefetchScalarGridSpec(
            num_scalar_prefetch=1,
            grid=(grid,),
            in_specs=[pl.BlockSpec((block_rows, _LANES), loss_index_map)],
            out_specs=pl.BlockSpec((block_rows, _LANES),
                                   lambda i, flag_ref: (i, 0)),
        ),
        compiler_params=pltpu.CompilerParams(
            dimension_semantics=("parallel",),
            vmem_limit_bytes=_VMEM_LIMIT_BYTES,
        ),
        # Donate the slab buffer to the output (inputs: flag=0, slab=1).
        input_output_aliases={1: 0},
    )(flag, slab)

    if padded:
        return out.reshape(-1)[:n].reshape(orig_shape)
    return out.reshape(orig_shape)


def display_if_exist(loss, find_property, *, use_pallas: bool = True) -> jax.Array:
    """Pallas/JAX equivalent of TaskLoss.display_if_exist.

    Returns `loss` unchanged if `find_property` is truthy, otherwise a
    NaN-filled tensor of the same shape. Set use_pallas=False to let XLA fuse
    a plain jnp.where with the producer of `loss` (preferred when `loss` is
    not already materialized in HBM).
    """
    loss = jnp.asarray(loss)

    # Static Python / numpy flag: branch at trace time, zero device work.
    if not isinstance(find_property, jax.Array):
        if bool(find_property):
            return loss
        nan_dtype = (loss.dtype if jnp.issubdtype(loss.dtype, jnp.floating)
                     else jnp.float32)
        return jnp.full(loss.shape, jnp.nan, nan_dtype)

    nan_dtype = (loss.dtype if jnp.issubdtype(loss.dtype, jnp.floating)
                 else jnp.float32)

    # Traced flag, scalar/empty loss (or caller prefers fusion): fused select.
    if loss.ndim == 0 or loss.size == 0 or not use_pallas:
        return jnp.where(find_property != 0,
                         loss.astype(nan_dtype),
                         jnp.asarray(jnp.nan, nan_dtype))

    # Traced flag, tensor loss: Pallas kernel.
    return _display_if_exist_pallas(loss, find_property)


class TaskLossPallas:
    """JAX/Pallas port of deepmd TaskLoss (abstract base class)."""

    def __init__(self, **kwargs):
        pass

    def forward(self, input_dict, model, label, natoms, learning_rate):
        raise NotImplementedError  # abstract in the reference module too

    @property
    def label_requirement(self):
        raise NotImplementedError  # abstract property, metadata only

    @staticmethod
    def display_if_exist(loss, find_property) -> jax.Array:
        return display_if_exist(loss, find_property)


if __name__ == "__main__":
    key = jax.random.PRNGKey(0)
    k1, k2, k3 = jax.random.split(key, 3)

    # Tensor losses at small, module-consistent shapes.
    loss_4d = jax.random.normal(k1, (2, 4, 16, 16), dtype=jnp.float32)      # 2048 elems, no pad
    loss_bf16 = jax.random.normal(k2, (8, 128), dtype=jnp.float32).astype(jnp.bfloat16)
    loss_ragged = jax.random.normal(k3, (3, 5, 7), dtype=jnp.float32)       # 105 elems, pad path
    loss_scalar = jnp.float32(0.12345)

    found_flag = jnp.float32(1.0)
    missing_flag = jnp.float32(0.0)

    # --- Kernel path: traced (device) flag ---------------------------------
    out_found = TaskLossPallas.display_if_exist(loss_4d, found_flag)
    out_missing = TaskLossPallas.display_if_exist(loss_4d, missing_flag)
    jax.block_until_ready((out_found, out_missing))
    assert out_found.shape == loss_4d.shape and out_found.dtype == loss_4d.dtype
    assert jnp.array_equal(out_found, loss_4d), "found-path mismatch (f32)"
    assert bool(jnp.all(jnp.isnan(out_missing))), "missing-path should be NaN (f32)"

    out_found_bf16 = TaskLossPallas.display_if_exist(loss_bf16, found_flag)
    out_missing_bf16 = TaskLossPallas.display_if_exist(loss_bf16, missing_flag)
    jax.block_until_ready((out_found_bf16, out_missing_bf16))
    assert out_found_bf16.dtype == jnp.bfloat16
    assert jnp.array_equal(out_found_bf16, loss_bf16), "found-path mismatch (bf16)"
    assert bool(jnp.all(jnp.isnan(out_missing_bf16.astype(jnp.float32)))), \
        "missing-path should be NaN (bf16)"

    out_found_rag = TaskLossPallas.display_if_exist(loss_ragged, found_flag)
    out_missing_rag = TaskLossPallas.display_if_exist(loss_ragged, missing_flag)
    jax.block_until_ready((out_found_rag, out_missing_rag))
    assert out_found_rag.shape == loss_ragged.shape
    assert jnp.array_equal(out_found_rag, loss_ragged), "found-path mismatch (ragged)"
    assert bool(jnp.all(jnp.isnan(out_missing_rag))), "missing-path should be NaN (ragged)"

    # --- Static Python flag: no device work --------------------------------
    out_static_found = TaskLossPallas.display_if_exist(loss_4d, 1.0)
    out_static_missing = TaskLossPallas.display_if_exist(loss_4d, 0.0)
    jax.block_until_ready((out_static_found, out_static_missing))
    assert out_static_found is loss_4d or jnp.array_equal(out_static_found, loss_4d)
    assert bool(jnp.all(jnp.isnan(out_static_missing)))

    # --- Scalar loss: fused select bypass ----------------------------------
    out_sc_found = TaskLossPallas.display_if_exist(loss_scalar, found_flag)
    out_sc_missing = TaskLossPallas.display_if_exist(loss_scalar, missing_flag)
    jax.block_until_ready((out_sc_found, out_sc_missing))
    assert jnp.allclose(out_sc_found, loss_scalar)
    assert bool(jnp.isnan(out_sc_missing))

    print("KERNEL_OK")
</pallas_src>

<mosaic_0001>
module attributes {stable_mosaic.version = 11 : i64} {
  func.func @_display_if_exist_kernel(%arg0: i32, %arg1: memref<1xi32, #tpu.memory_space<smem>>, %arg2: memref<8x128xf32, #tpu.memory_space<vmem>>, %arg3: memref<8x128xf32, #tpu.memory_space<vmem>>) attributes {dimension_semantics = [#tpu.dimension_semantics<parallel>], iteration_bounds = array<i64: 2>, scalar_prefetch = 1 : i64, scratch_operands = 0 : i64, tpu.core_type = #tpu.core_type<tc>, window_params = [{transform_indices = @transform_0, window_bounds = array<i64: 8, 128>}, {transform_indices = @transform_1, window_bounds = array<i64: 8, 128>}]} {
    %c0 = arith.constant 0 : index
    %0 = memref.load %arg1[%c0] : memref<1xi32, #tpu.memory_space<smem>>
    %c0_i32 = arith.constant 0 : i32
    %1 = arith.cmpi ne, %0, %c0_i32 : i32
    %2 = arith.extui %1 : i1 to i32
    %c0_i32_0 = arith.constant 0 : i32
    %3 = arith.cmpi ne, %2, %c0_i32_0 : i32
    scf.if %3 {
      %c0_2 = arith.constant 0 : index
      %c0_3 = arith.constant 0 : index
      %7 = vector.load %arg2[%c0_2, %c0_3] : memref<8x128xf32, #tpu.memory_space<vmem>>, vector<8x128xf32>
      %c0_4 = arith.constant 0 : index
      %c0_5 = arith.constant 0 : index
      %8 = vector.load %arg3[%c0_4, %c0_5] : memref<8x128xf32, #tpu.memory_space<vmem>>, vector<8x128xf32>
      tpu.vector_store %arg3[%c0_4, %c0_5], %7 {strides = array<i32>} : memref<8x128xf32, #tpu.memory_space<vmem>>, vector<8x128xf32>,
    } else {
    }
    %true = arith.constant true
    %4 = arith.xori %1, %true : i1
    %5 = arith.extui %4 : i1 to i32
    %c0_i32_1 = arith.constant 0 : i32
    %6 = arith.cmpi ne, %5, %c0_i32_1 : i32
    scf.if %6 {
      %cst = arith.constant 0x7FC00000 : f32
      %7 = vector.broadcast %cst : f32 to vector<8x128xf32>
      %c0_2 = arith.constant 0 : index
      %c0_3 = arith.constant 0 : index
      %8 = vector.load %arg3[%c0_2, %c0_3] : memref<8x128xf32, #tpu.memory_space<vmem>>, vector<8x128xf32>
      tpu.vector_store %arg3[%c0_2, %c0_3], %7 {strides = array<i32>} : memref<8x128xf32, #tpu.memory_space<vmem>>, vector<8x128xf32>,
    } else {
    }
    return
  }
  func.func @transform_0(%arg0: i32, %arg1: memref<1xi32, #tpu.memory_space<smem>>) -> (i32, i32) {
    %c0 = arith.constant 0 : index
    %0 = memref.load %arg1[%c0] : memref<1xi32, #tpu.memory_space<smem>>
    %c0_i32 = arith.constant 0 : i32
    %1 = arith.cmpi ne, %0, %c0_i32 : i32
    %c0_i32_0 = arith.constant 0 : i32
    %2 = arith.select %1, %arg0, %c0_i32_0 : i32
    %c0_i32_1 = arith.constant 0 : i32
    %c0_i32_2 = arith.constant 0 : i32
    return %2, %c0_i32_1 : i32, i32
  }
  func.func @transform_1(%arg0: i32, %arg1: memref<1xi32, #tpu.memory_space<smem>>) -> (i32, i32) {
    %c0_i32 = arith.constant 0 : i32
    %c0_i32_0 = arith.constant 0 : i32
    return %arg0, %c0_i32 : i32, i32
  }
}

</mosaic_0001>

<bundles_post_ra>
// kernel: tpu_custom_call.1
= control target key start
LH: loop header
LB: loop body
LE: loop exit
PB: predicated region body
PF: predicated region fallthrough
CT: control target
= control target key end

     0   :  { %s651_s0 = inlined_call_operand.<no memory space> [shape: s32[1], index: 0, kind: input, shape index: {}]   ;;  %s652_s1 = inlined_call_operand.hbm [shape: f32[16,128], index: 1, kind: input, shape index: {}, may-alias: {1,2}]   ;;  %s653_s2 = inlined_call_operand.hbm [shape: f32[16,128], index: 2, kind: output, shape index: {}, may-alias: {1,2}]  }
   0x1   :  { %7 = sst [smem:[#allocation3]] %s651_s0 }
   0x2   :  { %8 = vsyncpa [#allocation5], 0 }
   0x3   :  { %10 = vsyncpa [#allocation5 + $0x1], 0 }
   0x4   :  { %11 = vsyncpa [#allocation6], 0 }
   0x5   :  { %13 = vsyncpa [#allocation6 + $0x1], 0  ;;  %s470_s11 = smov 0   ;;  %s472_s12 = smov 0  }
   0x6   :  { %s474_s13 = smov 0   ;;  %s476_s14 = smov 0  }
   0x7   :  { %s478_s15 = smov 0   ;;  %s480_s16 = smov 0  }
   0x8   :  { %s482_s17 = smov 0  }
   0x9 LB: > { %s504_s0 = sadd.s32 4294967295, %s447_s17   ;;  %s242_s18 = sadd.s32 4294967294, %s447_s17   ;;  %s447_s17 = sphi %s482_s17, %s671_s17   ;;  %s443_s16 = sphi %s480_s16, %s670_s16   ;;  %s439_s15 = sphi %s478_s15, %s669_s15   ;;  %s435_s14 = sphi %s476_s14, %s668_s14   ;;  %s431_s13 = sphi %s474_s13, %s667_s13   ;;  %s427_s12 = sphi %s472_s12, %s666_s12   ;;  %s423_s11 = sphi %s470_s11, %s665_s11  }
   0xa   : > { %s508_s19 = sadd.s32 1, %s447_s17   ;;  %s23_s20 = sld [smem:[#allocation3]] }
   0xb   : > { %s32_s21 = sadd.s32 1, %s443_s16  ;;  %p39_p0 = scmp.ne.s32.totalorder %s443_s16, %s439_s15 }
   0xc   : > { %p40_p1 = scmp.eq.s32.totalorder %s447_s17, 0  ;;  %p45_p2 = scmp.ne.s32.totalorder %s439_s15, %s435_s14 }
   0xd   : > { %p46_p3 = scmp.eq.s32.totalorder %s504_s0, 0  ;;  %s55_s22 = ssub.s32 %s447_s17, %s508_s19 }
   0xe   : > { %p518_p4 = por %p40_p1, %p39_p0  ;;  %p56_p5 = scmp.eq.s32.totalorder %s55_s22, 0 }
   0xf   : > { %p522_p6 = por %p46_p3, %p45_p2  ;;  %s58_s25 = sadd.s32 1, %s431_s13 }
  0x10   : > { %p24_p7 = scmp.ne.s32.totalorder %s23_s20, 0  ;;  %p68_p8 = scmp.ne.s32.totalorder %s431_s13, %s427_s12 }
  0x11   : > { %s530_s26 = scalar_select %p56_p5, %s431_s13, %s58_s25  }
  0x12   : > { %s25_s27 = scalar_select %p24_p7, %s447_s17, 0 }
  0x13   : > { %s28_s28 = scalar_select %p24_p7, %s508_s19, 0 }
  0x14   : > { %p69_p9 = scmp.eq.s32.totalorder %s504_s0, 1  ;;  %p74_p10 = scmp.ne.s32.totalorder %s427_s12, %s423_s11 }
  0x15   : > { %s29_s29 = ssub.s32 %s25_s27, %s28_s28  ;;  %p75_p11 = scmp.eq.s32.totalorder %s242_s18, 1 }
  0x16   : > { %p30_p12 = scmp.eq.s32.totalorder %s29_s29, 0  ;;  %p537_p13 = por %p69_p9, %p68_p8 }
  0x17   : > { %p541_p0 = por %p75_p11, %p74_p10  ;;  %p268_p2 = scmp.lt.s32.totalorder %s447_s17, 2 }
  0x18   : > { %s657_s30 = scalar_select %p537_p13, 1, 0 }
  0x19   : > { %s658_s3 = scalar_select %p541_p0, 1, 0 }
  0x1a   : > { %s547_s4 = scalar_select %p30_p12, %s443_s16, %s32_s21  }
  0x1b   : > { %s95_s5 = sand.u32 1, %s443_s16   ;;  %s246_s7 = sshll.u32 %s25_s27, 7 }
  0x1c   : > { %s245_s6 = sshll.u32 %s95_s5, 3  ;;  %s554_s10 = scalar_lea.hbm %s652_s1, %s246_s7 }
  0x1d   : > { %s99_s14 = scalar_lea.vmem [#allocation4], %s245_s6  ;;  %p560_p3 = pnand %p268_p2, %p518_p4 }
  0x1e   : > { %s109_s18 = sshll.u32 %s99_s14, 4  ;;  %s96_s21 = scalar_lea.sflag [#allocation5], %s95_s5  ;;  %s556_s18 = int_to_ptr.vmem [resolvable:$true] %s109_s18 }
  0x1f   : > { %s327_s22 = scalar_lea.hbm %s554_s10, 128  ;;  %p329_p9 = pneg %p560_p3 }
  0x20   : > { %p328_p8 = scmp.ne.s32.totalorder %s554_s10, %s327_s22  ;;  %s332_s23 = scalar_lea.hbm %s652_s1, 256 }
  0x21   : > { %p333_p4 = scmp.lt.u32.totalorder %s554_s10, %s652_s1  ;;  %p334_p12 = scmp.lt.u32.totalorder %s332_s23, %s327_s22 }
  0x22   : > { %p330_p10 = pnand %p329_p9, %p328_p8  ;;  %p336_p1 = scmp.lt.u32.totalorder %s327_s22, %s554_s10 }
  0x23   : > { %p335_p2 = por %p334_p12, %p333_p4 }
  0x24   : > { %p331_p11 = pneg %p330_p10 }
  0x25   : > { %p337_p5 = por %p336_p1, %p335_p2 }
  0x27   : > { %p338_p7 = pnand %p337_p5, %p331_p11 }
  0x29   : > { %341 = shalt.err (!%p338_p7)
}
  0x2a   : > { %s342_s5 = scalar_lea.vmem %s556_s18, 128  ;;  %s449_s6 = smov [#allocation4]  }
  0x2b   : > { %p343_p8 = scmp.ne.s32.totalorder %s556_s18, %s342_s5  ;;  %s347_s7 = sshll.u32 %s449_s6, 4  ;;  %s348_s7 = int_to_ptr.vmem [resolvable:$false] %s347_s7 }
  0x2c   : > { %s349_s8 = scalar_lea.vmem %s348_s7, 256  ;;  %p350_p13 = scmp.lt.s32.totalorder %s556_s18, %s348_s7 }
  0x2d   : > { %p345_p10 = pnand %p343_p8, %p329_p9  ;;  %p351_p4 = scmp.lt.s32.totalorder %s349_s8, %s342_s5 }
  0x2f   : > { %p346_p0 = pneg %p345_p10  ;;  %p352_p12 = por %p351_p4, %p350_p13 }
  0x31   : > { %p353_p1 = pnand %p352_p12, %p346_p0 }
  0x33   : > { %356 = shalt.err (!%p353_p1)
}
  0x34   : > { %263 = dma.hbm_to_vmem [thread:$0]  (!%p560_p3), %s554_s10, 128, %s556_s18, %s96_s21  }
  0x35   : > { %p660_p5 = scmp.lt.s32.totalorder %s447_s17, 3  ;;  %p661_p7 = scmp.ge.s32.totalorder %s447_s17, 1 }
  0x37   : > { %p115_p9 = pnand %p661_p7, %p660_p5 }
  0x38   : > { %s120_s9 = sand.u32 (!%p115_p9), 1, %s439_s15  }
  0x39   : > { %118 = sbr.rel (%p115_p9) target bundleno = 114 (0x72), region = 24  ;;  %s248_s14 = sshll.u32 (!%p115_p9), %s120_s9, 3 }
  0x3a   : > { %s121_s22 = scalar_lea.sflag (!%p115_p9), [#allocation5], %s120_s9  ;;  %s124_s25 = scalar_lea.vmem (!%p115_p9), [#allocation4], %s248_s14 }
  0x40   : > { %414 = dma.done.wait (%p522_p6), %s121_s22, 128  }
  0x41   : > { %416 = vsyncadd (%p522_p6), %s121_s22, 4294967168  ;;  %s140_s20 = sand.u32 1, %s427_s12   ;;  %s146_s27 = sld [smem:[#allocation3]] }
  0x42   : > { %s249_s23 = sshll.u32 %s140_s20, 3 }
  0x43   : > { %s142_s10 = scalar_lea.vmem [#allocation7], %s249_s23 }
  0x47   : > { %p250_p13 = scmp.eq.s32.totalorder %s146_s27, 0 }
  0x48   : > { %v151_v0 = vld [vmem:[%s124_s25] sm:$0xff] (!%p250_p13) }
  0x49   : > { %150 = sbr.rel (%p250_p13) target bundleno = 80 (0x50), region = 32  ;;  %152 = vst [vmem:[%s142_s10] sm:$0xff] (!%p250_p13), %v151_v0 }
  0x50 PF: > { %p251_p0 = scmp.ne.s32.totalorder %s146_s27, 0 }
  0x51   : > { %v450_v1 = vmov (!%p251_p0), nan  }
  0x52   : > { %156 = sbr.rel (%p251_p0) target bundleno = 89 (0x59), region = 36  ;;  %157 = vst [vmem:[%s142_s10] sm:$0xff] (!%p251_p0), %v450_v1 }
  0x59 PF: > { %s253_s18 = sshll.u32 %s504_s0, 7  ;;  %s172_s29 = sshll.u32 %s142_s10, 4  ;;  %s173_s29 = int_to_ptr.vmem [resolvable:$true] %s172_s29 }
  0x5a   : > { %s605_s28 = scalar_lea.hbm %s653_s2, %s253_s18  ;;  %s159_s5 = scalar_lea.sflag [#allocation6], %s140_s20 }
  0x5b   : > { %s357_s6 = scalar_lea.vmem %s173_s29, 128  ;;  %p662_p3 = scmp.ne.s32.totalorder %s657_s30, 0 }
  0x5c   : > { %p358_p6 = scmp.ne.s32.totalorder %s173_s29, %s357_s6  ;;  %s451_s7 = smov [#allocation7]  }
  0x5d   : > { %s361_s8 = sshll.u32 %s451_s7, 4  ;;  %s362_s8 = int_to_ptr.vmem [resolvable:$false] %s361_s8 }
  0x5e   : > { %p359_p11 = pnand %p358_p6, %p662_p3  ;;  %s363_s9 = scalar_lea.vmem %s362_s8, 256 }
  0x5f   : > { %p364_p8 = scmp.lt.s32.totalorder %s173_s29, %s362_s8  ;;  %p365_p10 = scmp.lt.s32.totalorder %s363_s9, %s357_s6 }
  0x60   : > { %p360_p2 = pneg %p359_p11 }
  0x61   : > { %p366_p4 = por %p365_p10, %p364_p8 }
  0x63   : > { %p367_p12 = pnand %p366_p4, %p360_p2 }
  0x65   : > { %370 = shalt.err (!%p367_p12)
}
  0x66   : > { %s371_s0 = scalar_lea.hbm %s605_s28, 128  ;;  %s375_s25 = scalar_lea.hbm %s653_s2, 256 }
  0x67   : > { %p372_p1 = scmp.ne.s32.totalorder %s605_s28, %s371_s0  ;;  %p376_p9 = scmp.lt.u32.totalorder %s605_s28, %s653_s2 }
  0x68   : > { %p377_p13 = scmp.lt.u32.totalorder %s375_s25, %s371_s0  ;;  %p379_p6 = scmp.lt.u32.totalorder %s371_s0, %s605_s28 }
  0x69   : > { %p373_p5 = pnand %p372_p1, %p662_p3 }
  0x6a   : > { %p378_p0 = por %p377_p13, %p376_p9 }
  0x6b   : > { %p374_p7 = pneg %p373_p5 }
  0x6c   : > { %p380_p11 = por %p379_p6, %p378_p0 }
  0x6e   : > { %p381_p2 = pnand %p380_p11, %p374_p7 }
  0x70   : > { %384 = shalt.err (!%p381_p2)
}
  0x71   : > { %258 = dma.vmem_to_hbm [thread:$0]  (%p662_p3), %s173_s29, 128, %s605_s28, %s159_s5  }
  0x72 PF: > { %s184_s23 = sand.u32 1, %s423_s11   ;;  %p663_p8 = scmp.ne.s32.totalorder %s658_s3, 0 }
  0x73   : > { %p664_p10 = scmp.ge.s32.totalorder %s447_s17, 2  ;;  %s185_s10 = scalar_lea.sflag [#allocation6], %s184_s23 }
  0x75   : > { %p265_p4 = pnand %p664_p10, %p663_p8 }
  0x77   : > { %418 = dma.done.wait (!%p265_p4), %s185_s10, 128  }
  0x78   : > { %420 = vsyncadd (!%p265_p4), %s185_s10, 4294967168  ;;  %p16_p3 = scmp.ge.s32.totalorder %s508_s19, 4   ;;  %s665_s11 = smov %s427_s12 }
  0x79   : > { %s666_s12 = smov %s431_s13  ;;  %s667_s13 = smov %s530_s26 }
  0x7a   : > { %s668_s14 = smov %s439_s15  ;;  %s669_s15 = smov %s443_s16 }
  0x7b   : > { %s670_s16 = smov %s547_s4  ;;  %s671_s17 = smov %s508_s19 }
  0x7c   :  { %18 = sbr.rel (!%p16_p3) target bundleno = 9 (0x9), region = 77 }
  0x83   :  { %190 = vsyncpa [#allocation5], 1 }
  0x84   :  { %192 = vsyncpa [#allocation5 + $0x1], 1 }
  0x85   :  { %193 = vsyncpa [#allocation6], 1 }
  0x86   :  { %195 = vsyncpa [#allocation6 + $0x1], 1 }

</bundles_post_ra>
